<compile_context>
chip_gen: v5e
topology: v5e:2x2
jax: 0.10.0
libtpu: 0.0.40
codegen_flags: <defaults>
</compile_context>

<pallas_src>
import jax
import jax.numpy as jnp
from jax.experimental import pallas as pl
from jax.experimental.pallas import tpu as pltpu

LEAKY_SLOPE = 0.01  # F.leaky_relu default negative_slope

# (in_features, out_features) for each Linear in forward() order
LAYER_DIMS = [
    (5, 7),    # fc1
    (7, 10),   # fc2
    (10, 10),  # fc3
    (10, 10),  # fc4
    (10, 10),  # fc5
    (10, 10),  # fc6
    (10, 7),   # fcn_2
    (7, 5),    # fcn_1
    (5, 2),    # fcn
]
N_LAYERS = len(LAYER_DIMS)
IN_DIM = LAYER_DIMS[0][0]      # 5
OUT_DIM = LAYER_DIMS[-1][1]    # 2
F_PAD = 16                     # all feature widths (5..10) padded to 16 sublanes


def mlp_softmax_kernel(x_ref, w_ref, b_ref, out_ref):
    """One batch tile: 9 chained (16,16)@(16,TB) matmuls + leaky_relu, softmax.

    x_ref  : (F_PAD, TB)            transposed, feature-padded activations
    w_ref  : (N_LAYERS, F_PAD, F_PAD) packed weights, torch (out, in) layout
    b_ref  : (N_LAYERS, F_PAD, TB)  packed biases, pre-broadcast across lanes
    out_ref: (OUT_DIM, TB)          softmax probabilities (transposed)
    """
    x = x_ref[...]                                    # (16, TB) f32
    for i in range(N_LAYERS):                         # static unroll
        w = w_ref[i]                                  # (16, 16)  static view/load
        b = b_ref[i]                                  # (16, TB)  no per-layer broadcast
        x = jnp.dot(w, x, preferred_element_type=jnp.float32) + b
        if i < N_LAYERS - 1:
            x = jnp.where(x > 0, x, LEAKY_SLOPE * x)  # F.leaky_relu

    # Padded feature rows (>= OUT_DIM) stay exactly 0 through the chain and are
    # dropped here; softmax (torch dim=1) runs over the 2 valid feature rows.
    logits = x[:OUT_DIM, :]                           # (2, TB)
    m = jnp.max(logits, axis=0, keepdims=True)
    e = jnp.exp(logits - m)
    s = jnp.sum(e, axis=0, keepdims=True)
    out_ref[...] = e * pl.reciprocal(s, approx=True)  # divide -> EUP reciprocal


def init_params(key):
    """Deterministic PyTorch-style init: U(-1/sqrt(fan_in), 1/sqrt(fan_in)).

    Weights kept in torch layout (out_features, in_features)."""
    params = []
    for (fan_in, fan_out) in LAYER_DIMS:
        key, kw, kb = jax.random.split(key, 3)
        bound = 1.0 / float(fan_in) ** 0.5
        w = jax.random.uniform(kw, (fan_out, fan_in), jnp.float32,
                               minval=-bound, maxval=bound)
        b = jax.random.uniform(kb, (fan_out,), jnp.float32,
                               minval=-bound, maxval=bound)
        params.append((w, b))
    return params


def pack_params(params, tb):
    """Pack per-layer (w, b) into two zero-padded VMEM-friendly slabs."""
    w_slab = jnp.zeros((N_LAYERS, F_PAD, F_PAD), jnp.float32)
    b_slab = jnp.zeros((N_LAYERS, F_PAD, tb), jnp.float32)
    for i, (w, b) in enumerate(params):
        o, k = w.shape
        w_slab = w_slab.at[i, :o, :k].set(w)
        # pre-broadcast bias across the lane (batch-tile) axis once, at prep time
        b_slab = b_slab.at[i, :o, :].set(jnp.broadcast_to(b[:, None], (o, tb)))
    return w_slab, b_slab


def my_net_forward(x, packed, *, tb=128):
    """x: (batch, 5) f32  ->  (batch, 2) softmax probabilities."""
    w_slab, b_slab = packed
    batch = x.shape[0]
    pb = pl.cdiv(batch, tb) * tb  # pad batch to a multiple of the lane tile

    # Transposed, zero-padded input: (F_PAD, pb), batch on lanes.
    x_t = jnp.zeros((F_PAD, pb), jnp.float32)
    x_t = x_t.at[:IN_DIM, :batch].set(x.T)

    out_t = pl.pallas_call(
        mlp_softmax_kernel,
        out_shape=jax.ShapeDtypeStruct((OUT_DIM, pb), jnp.float32),
        grid_spec=pltpu.PrefetchScalarGridSpec(
            num_scalar_prefetch=0,
            grid=(pb // tb,),
            in_specs=[
                pl.BlockSpec((F_PAD, tb), lambda i: (0, i)),                 # x tile
                pl.BlockSpec((N_LAYERS, F_PAD, F_PAD), lambda i: (0, 0, 0)),  # weights (resident)
                pl.BlockSpec((N_LAYERS, F_PAD, tb), lambda i: (0, 0, 0)),     # biases  (resident)
            ],
            out_specs=pl.BlockSpec((OUT_DIM, tb), lambda i: (0, i)),
        ),
        compiler_params=pltpu.CompilerParams(
            dimension_semantics=("parallel",),  # batch axis -> both TCs on v7x
        ),
    )(x_t, w_slab, b_slab)

    return out_t[:, :batch].T  # (batch, 2)


def my_net_reference(x, params):
    """Pure-JAX reference (torch-layout weights) for correctness checking."""
    h = x
    n = len(params)
    for i, (w, b) in enumerate(params):
        h = h @ w.T + b
        if i < n - 1:
            h = jnp.where(h > 0, h, LEAKY_SLOPE * h)
    return jax.nn.softmax(h, axis=1)


if __name__ == "__main__":
    key = jax.random.PRNGKey(0)
    key, kx = jax.random.split(key)

    batch = 256            # small, but exercises the 2-step batch grid (tb=128)
    tb = 128
    x = jax.random.normal(kx, (batch, 5), jnp.float32)
    params = init_params(key)
    packed = pack_params(params, tb)

    out = my_net_forward(x, packed, tb=tb)
    out = jax.block_until_ready(out)

    ref = my_net_reference(x, params)
    assert out.shape == (batch, 2)
    # approx reciprocal in the softmax epilogue => ~2e-4 rel error budget
    assert jnp.allclose(out, ref, atol=1e-3, rtol=1e-3), "mismatch vs reference"
    assert jnp.allclose(jnp.sum(out, axis=1), 1.0, atol=2e-3), "softmax rows != 1"

    print("KERNEL_OK")
</pallas_src>

<mosaic_0001>
module attributes {stable_mosaic.version = 11 : i64} {
  func.func @mlp_softmax_kernel(%arg0: i32, %arg1: memref<16x128xf32, #tpu.memory_space<vmem>>, %arg2: memref<9x16x16xf32, #tpu.memory_space<vmem>>, %arg3: memref<9x16x128xf32, #tpu.memory_space<vmem>>, %arg4: memref<2x128xf32, #tpu.memory_space<vmem>>) attributes {dimension_semantics = [#tpu.dimension_semantics<parallel>], iteration_bounds = array<i64: 2>, scalar_prefetch = 0 : i64, scratch_operands = 0 : i64, tpu.core_type = #tpu.core_type<tc>, window_params = [{transform_indices = @transform_0, window_bounds = array<i64: 16, 128>}, {pipeline_mode = #tpu.pipeline_mode<synchronous>, transform_indices = @transform_1, window_bounds = array<i64: 9, 16, 16>}, {pipeline_mode = #tpu.pipeline_mode<synchronous>, transform_indices = @transform_2, window_bounds = array<i64: 9, 16, 128>}, {transform_indices = @transform_3, window_bounds = array<i64: 2, 128>}]} {
    %c0 = arith.constant 0 : index
    %c0_0 = arith.constant 0 : index
    %0 = vector.load %arg1[%c0, %c0_0] : memref<16x128xf32, #tpu.memory_space<vmem>>, vector<16x128xf32>
    %c0_1 = arith.constant 0 : index
    %c0_2 = arith.constant 0 : index
    %c0_3 = arith.constant 0 : index
    %1 = vector.load %arg2[%c0_1, %c0_2, %c0_3] : memref<9x16x16xf32, #tpu.memory_space<vmem>>, vector<1x16x16xf32>
    %2 = vector.shape_cast %1 : vector<1x16x16xf32> to vector<16x16xf32>
    %c0_4 = arith.constant 0 : index
    %c0_5 = arith.constant 0 : index
    %c0_6 = arith.constant 0 : index
    %3 = vector.load %arg3[%c0_4, %c0_5, %c0_6] : memref<9x16x128xf32, #tpu.memory_space<vmem>>, vector<1x16x128xf32>
    %4 = vector.shape_cast %3 : vector<1x16x128xf32> to vector<16x128xf32>
    %cst = arith.constant dense<0.000000e+00> : vector<16x128xf32>
    %5 = tpu.matmul %2, %0, %cst {dimension_numbers = #tpu.dot_dimension_numbers<[1], [0], [0], [1], [0, 0, 1, 1], [], []>} : vector<16x16xf32>, vector<16x128xf32>, vector<16x128xf32> -> vector<16x128xf32>
    %6 = arith.addf %5, %4 : vector<16x128xf32>
    %cst_7 = arith.constant 0.000000e+00 : f32
    %7 = vector.broadcast %cst_7 : f32 to vector<16x128xf32>
    %8 = arith.cmpf ogt, %6, %7 : vector<16x128xf32>
    %cst_8 = arith.constant 0.00999999977 : f32
    %9 = vector.broadcast %cst_8 : f32 to vector<16x128xf32>
    %10 = arith.mulf %9, %6 : vector<16x128xf32>
    %11 = arith.select %8, %6, %10 : vector<16x128xi1>, vector<16x128xf32>
    %c1 = arith.constant 1 : index
    %c0_9 = arith.constant 0 : index
    %c0_10 = arith.constant 0 : index
    %12 = vector.load %arg2[%c1, %c0_9, %c0_10] : memref<9x16x16xf32, #tpu.memory_space<vmem>>, vector<1x16x16xf32>
    %13 = vector.shape_cast %12 : vector<1x16x16xf32> to vector<16x16xf32>
    %c1_11 = arith.constant 1 : index
    %c0_12 = arith.constant 0 : index
    %c0_13 = arith.constant 0 : index
    %14 = vector.load %arg3[%c1_11, %c0_12, %c0_13] : memref<9x16x128xf32, #tpu.memory_space<vmem>>, vector<1x16x128xf32>
    %15 = vector.shape_cast %14 : vector<1x16x128xf32> to vector<16x128xf32>
    %cst_14 = arith.constant dense<0.000000e+00> : vector<16x128xf32>
    %16 = tpu.matmul %13, %11, %cst_14 {dimension_numbers = #tpu.dot_dimension_numbers<[1], [0], [0], [1], [0, 0, 1, 1], [], []>} : vector<16x16xf32>, vector<16x128xf32>, vector<16x128xf32> -> vector<16x128xf32>
    %17 = arith.addf %16, %15 : vector<16x128xf32>
    %cst_15 = arith.constant 0.000000e+00 : f32
    %18 = vector.broadcast %cst_15 : f32 to vector<16x128xf32>
    %19 = arith.cmpf ogt, %17, %18 : vector<16x128xf32>
    %cst_16 = arith.constant 0.00999999977 : f32
    %20 = vector.broadcast %cst_16 : f32 to vector<16x128xf32>
    %21 = arith.mulf %20, %17 : vector<16x128xf32>
    %22 = arith.select %19, %17, %21 : vector<16x128xi1>, vector<16x128xf32>
    %c2 = arith.constant 2 : index
    %c0_17 = arith.constant 0 : index
    %c0_18 = arith.constant 0 : index
    %23 = vector.load %arg2[%c2, %c0_17, %c0_18] : memref<9x16x16xf32, #tpu.memory_space<vmem>>, vector<1x16x16xf32>
    %24 = vector.shape_cast %23 : vector<1x16x16xf32> to vector<16x16xf32>
    %c2_19 = arith.constant 2 : index
    %c0_20 = arith.constant 0 : index
    %c0_21 = arith.constant 0 : index
    %25 = vector.load %arg3[%c2_19, %c0_20, %c0_21] : memref<9x16x128xf32, #tpu.memory_space<vmem>>, vector<1x16x128xf32>
    %26 = vector.shape_cast %25 : vector<1x16x128xf32> to vector<16x128xf32>
    %cst_22 = arith.constant dense<0.000000e+00> : vector<16x128xf32>
    %27 = tpu.matmul %24, %22, %cst_22 {dimension_numbers = #tpu.dot_dimension_numbers<[1], [0], [0], [1], [0, 0, 1, 1], [], []>} : vector<16x16xf32>, vector<16x128xf32>, vector<16x128xf32> -> vector<16x128xf32>
    %28 = arith.addf %27, %26 : vector<16x128xf32>
    %cst_23 = arith.constant 0.000000e+00 : f32
    %29 = vector.broadcast %cst_23 : f32 to vector<16x128xf32>
    %30 = arith.cmpf ogt, %28, %29 : vector<16x128xf32>
    %cst_24 = arith.constant 0.00999999977 : f32
    %31 = vector.broadcast %cst_24 : f32 to vector<16x128xf32>
    %32 = arith.mulf %31, %28 : vector<16x128xf32>
    %33 = arith.select %30, %28, %32 : vector<16x128xi1>, vector<16x128xf32>
    %c3 = arith.constant 3 : index
    %c0_25 = arith.constant 0 : index
    %c0_26 = arith.constant 0 : index
    %34 = vector.load %arg2[%c3, %c0_25, %c0_26] : memref<9x16x16xf32, #tpu.memory_space<vmem>>, vector<1x16x16xf32>
    %35 = vector.shape_cast %34 : vector<1x16x16xf32> to vector<16x16xf32>
    %c3_27 = arith.constant 3 : index
    %c0_28 = arith.constant 0 : index
    %c0_29 = arith.constant 0 : index
    %36 = vector.load %arg3[%c3_27, %c0_28, %c0_29] : memref<9x16x128xf32, #tpu.memory_space<vmem>>, vector<1x16x128xf32>
    %37 = vector.shape_cast %36 : vector<1x16x128xf32> to vector<16x128xf32>
    %cst_30 = arith.constant dense<0.000000e+00> : vector<16x128xf32>
    %38 = tpu.matmul %35, %33, %cst_30 {dimension_numbers = #tpu.dot_dimension_numbers<[1], [0], [0], [1], [0, 0, 1, 1], [], []>} : vector<16x16xf32>, vector<16x128xf32>, vector<16x128xf32> -> vector<16x128xf32>
    %39 = arith.addf %38, %37 : vector<16x128xf32>
    %cst_31 = arith.constant 0.000000e+00 : f32
    %40 = vector.broadcast %cst_31 : f32 to vector<16x128xf32>
    %41 = arith.cmpf ogt, %39, %40 : vector<16x128xf32>
    %cst_32 = arith.constant 0.00999999977 : f32
    %42 = vector.broadcast %cst_32 : f32 to vector<16x128xf32>
    %43 = arith.mulf %42, %39 : vector<16x128xf32>
    %44 = arith.select %41, %39, %43 : vector<16x128xi1>, vector<16x128xf32>
    %c4 = arith.constant 4 : index
    %c0_33 = arith.constant 0 : index
    %c0_34 = arith.constant 0 : index
    %45 = vector.load %arg2[%c4, %c0_33, %c0_34] : memref<9x16x16xf32, #tpu.memory_space<vmem>>, vector<1x16x16xf32>
    %46 = vector.shape_cast %45 : vector<1x16x16xf32> to vector<16x16xf32>
    %c4_35 = arith.constant 4 : index
    %c0_36 = arith.constant 0 : index
    %c0_37 = arith.constant 0 : index
    %47 = vector.load %arg3[%c4_35, %c0_36, %c0_37] : memref<9x16x128xf32, #tpu.memory_space<vmem>>, vector<1x16x128xf32>
    %48 = vector.shape_cast %47 : vector<1x16x128xf32> to vector<16x128xf32>
    %cst_38 = arith.constant dense<0.000000e+00> : vector<16x128xf32>
    %49 = tpu.matmul %46, %44, %cst_38 {dimension_numbers = #tpu.dot_dimension_numbers<[1], [0], [0], [1], [0, 0, 1, 1], [], []>} : vector<16x16xf32>, vector<16x128xf32>, vector<16x128xf32> -> vector<16x128xf32>
    %50 = arith.addf %49, %48 : vector<16x128xf32>
    %cst_39 = arith.constant 0.000000e+00 : f32
    %51 = vector.broadcast %cst_39 : f32 to vector<16x128xf32>
    %52 = arith.cmpf ogt, %50, %51 : vector<16x128xf32>
    %cst_40 = arith.constant 0.00999999977 : f32
    %53 = vector.broadcast %cst_40 : f32 to vector<16x128xf32>
    %54 = arith.mulf %53, %50 : vector<16x128xf32>
    %55 = arith.select %52, %50, %54 : vector<16x128xi1>, vector<16x128xf32>
    %c5 = arith.constant 5 : index
    %c0_41 = arith.constant 0 : index
    %c0_42 = arith.constant 0 : index
    %56 = vector.load %arg2[%c5, %c0_41, %c0_42] : memref<9x16x16xf32, #tpu.memory_space<vmem>>, vector<1x16x16xf32>
    %57 = vector.shape_cast %56 : vector<1x16x16xf32> to vector<16x16xf32>
    %c5_43 = arith.constant 5 : index
    %c0_44 = arith.constant 0 : index
    %c0_45 = arith.constant 0 : index
    %58 = vector.load %arg3[%c5_43, %c0_44, %c0_45] : memref<9x16x128xf32, #tpu.memory_space<vmem>>, vector<1x16x128xf32>
    %59 = vector.shape_cast %58 : vector<1x16x128xf32> to vector<16x128xf32>
    %cst_46 = arith.constant dense<0.000000e+00> : vector<16x128xf32>
    %60 = tpu.matmul %57, %55, %cst_46 {dimension_numbers = #tpu.dot_dimension_numbers<[1], [0], [0], [1], [0, 0, 1, 1], [], []>} : vector<16x16xf32>, vector<16x128xf32>, vector<16x128xf32> -> vector<16x128xf32>
    %61 = arith.addf %60, %59 : vector<16x128xf32>
    %cst_47 = arith.constant 0.000000e+00 : f32
    %62 = vector.broadcast %cst_47 : f32 to vector<16x128xf32>
    %63 = arith.cmpf ogt, %61, %62 : vector<16x128xf32>
    %cst_48 = arith.constant 0.00999999977 : f32
    %64 = vector.broadcast %cst_48 : f32 to vector<16x128xf32>
    %65 = arith.mulf %64, %61 : vector<16x128xf32>
    %66 = arith.select %63, %61, %65 : vector<16x128xi1>, vector<16x128xf32>
    %c6 = arith.constant 6 : index
    %c0_49 = arith.constant 0 : index
    %c0_50 = arith.constant 0 : index
    %67 = vector.load %arg2[%c6, %c0_49, %c0_50] : memref<9x16x16xf32, #tpu.memory_space<vmem>>, vector<1x16x16xf32>
    %68 = vector.shape_cast %67 : vector<1x16x16xf32> to vector<16x16xf32>
    %c6_51 = arith.constant 6 : index
    %c0_52 = arith.constant 0 : index
    %c0_53 = arith.constant 0 : index
    %69 = vector.load %arg3[%c6_51, %c0_52, %c0_53] : memref<9x16x128xf32, #tpu.memory_space<vmem>>, vector<1x16x128xf32>
    %70 = vector.shape_cast %69 : vector<1x16x128xf32> to vector<16x128xf32>
    %cst_54 = arith.constant dense<0.000000e+00> : vector<16x128xf32>
    %71 = tpu.matmul %68, %66, %cst_54 {dimension_numbers = #tpu.dot_dimension_numbers<[1], [0], [0], [1], [0, 0, 1, 1], [], []>} : vector<16x16xf32>, vector<16x128xf32>, vector<16x128xf32> -> vector<16x128xf32>
    %72 = arith.addf %71, %70 : vector<16x128xf32>
    %cst_55 = arith.constant 0.000000e+00 : f32
    %73 = vector.broadcast %cst_55 : f32 to vector<16x128xf32>
    %74 = arith.cmpf ogt, %72, %73 : vector<16x128xf32>
    %cst_56 = arith.constant 0.00999999977 : f32
    %75 = vector.broadcast %cst_56 : f32 to vector<16x128xf32>
    %76 = arith.mulf %75, %72 : vector<16x128xf32>
    %77 = arith.select %74, %72, %76 : vector<16x128xi1>, vector<16x128xf32>
    %c7 = arith.constant 7 : index
    %c0_57 = arith.constant 0 : index
    %c0_58 = arith.constant 0 : index
    %78 = vector.load %arg2[%c7, %c0_57, %c0_58] : memref<9x16x16xf32, #tpu.memory_space<vmem>>, vector<1x16x16xf32>
    %79 = vector.shape_cast %78 : vector<1x16x16xf32> to vector<16x16xf32>
    %c7_59 = arith.constant 7 : index
    %c0_60 = arith.constant 0 : index
    %c0_61 = arith.constant 0 : index
    %80 = vector.load %arg3[%c7_59, %c0_60, %c0_61] : memref<9x16x128xf32, #tpu.memory_space<vmem>>, vector<1x16x128xf32>
    %81 = vector.shape_cast %80 : vector<1x16x128xf32> to vector<16x128xf32>
    %cst_62 = arith.constant dense<0.000000e+00> : vector<16x128xf32>
    %82 = tpu.matmul %79, %77, %cst_62 {dimension_numbers = #tpu.dot_dimension_numbers<[1], [0], [0], [1], [0, 0, 1, 1], [], []>} : vector<16x16xf32>, vector<16x128xf32>, vector<16x128xf32> -> vector<16x128xf32>
    %83 = arith.addf %82, %81 : vector<16x128xf32>
    %cst_63 = arith.constant 0.000000e+00 : f32
    %84 = vector.broadcast %cst_63 : f32 to vector<16x128xf32>
    %85 = arith.cmpf ogt, %83, %84 : vector<16x128xf32>
    %cst_64 = arith.constant 0.00999999977 : f32
    %86 = vector.broadcast %cst_64 : f32 to vector<16x128xf32>
    %87 = arith.mulf %86, %83 : vector<16x128xf32>
    %88 = arith.select %85, %83, %87 : vector<16x128xi1>, vector<16x128xf32>
    %c8 = arith.constant 8 : index
    %c0_65 = arith.constant 0 : index
    %c0_66 = arith.constant 0 : index
    %89 = vector.load %arg2[%c8, %c0_65, %c0_66] : memref<9x16x16xf32, #tpu.memory_space<vmem>>, vector<1x16x16xf32>
    %90 = vector.shape_cast %89 : vector<1x16x16xf32> to vector<16x16xf32>
    %c8_67 = arith.constant 8 : index
    %c0_68 = arith.constant 0 : index
    %c0_69 = arith.constant 0 : index
    %91 = vector.load %arg3[%c8_67, %c0_68, %c0_69] : memref<9x16x128xf32, #tpu.memory_space<vmem>>, vector<1x16x128xf32>
    %92 = vector.shape_cast %91 : vector<1x16x128xf32> to vector<16x128xf32>
    %cst_70 = arith.constant dense<0.000000e+00> : vector<16x128xf32>
    %93 = tpu.matmul %90, %88, %cst_70 {dimension_numbers = #tpu.dot_dimension_numbers<[1], [0], [0], [1], [0, 0, 1, 1], [], []>} : vector<16x16xf32>, vector<16x128xf32>, vector<16x128xf32> -> vector<16x128xf32>
    %94 = arith.addf %93, %92 : vector<16x128xf32>
    %95 = vector.extract_strided_slice %94 {offsets = [0, 0], sizes = [2, 128], strides = [1, 1]} : vector<16x128xf32> to vector<2x128xf32>
    %cst_71 = arith.constant dense<0xFF800000> : vector<128xf32>
    %96 = vector.multi_reduction <maximumf>, %95, %cst_71 [0] : vector<2x128xf32> to vector<128xf32>
    %97 = vector.shape_cast %96 : vector<128xf32> to vector<1x128xf32>
    %98 = vector.broadcast %97 : vector<1x128xf32> to vector<2x128xf32>
    %99 = arith.subf %95, %98 : vector<2x128xf32>
    %100 = math.exp %99 : vector<2x128xf32>
    %cst_72 = arith.constant dense<0.000000e+00> : vector<128xf32>
    %101 = vector.multi_reduction <add>, %100, %cst_72 [0] : vector<2x128xf32> to vector<128xf32>
    %102 = vector.shape_cast %101 : vector<128xf32> to vector<1x128xf32>
    %103 = tpu.reciprocal %102 {approx = true} : vector<1x128xf32> -> vector<1x128xf32>
    %104 = vector.broadcast %103 : vector<1x128xf32> to vector<2x128xf32>
    %105 = arith.mulf %100, %104 : vector<2x128xf32>
    %c0_73 = arith.constant 0 : index
    %c0_74 = arith.constant 0 : index
    %106 = vector.load %arg4[%c0_73, %c0_74] : memref<2x128xf32, #tpu.memory_space<vmem>>, vector<2x128xf32>
    tpu.vector_store %arg4[%c0_73, %c0_74], %105 {strides = array<i32>} : memref<2x128xf32, #tpu.memory_space<vmem>>, vector<2x128xf32>,
    return
  }
  func.func @transform_0(%arg0: i32) -> (i32, i32) {
    %c0_i32 = arith.constant 0 : i32
    %c0_i32_0 = arith.constant 0 : i32
    return %c0_i32, %arg0 : i32, i32
  }
  func.func @transform_1(%arg0: i32) -> (i32, i32, i32) {
    %c0_i32 = arith.constant 0 : i32
    %c0_i32_0 = arith.constant 0 : i32
    %c0_i32_1 = arith.constant 0 : i32
    %c0_i32_2 = arith.constant 0 : i32
    return %c0_i32, %c0_i32_0, %c0_i32_1 : i32, i32, i32
  }
  func.func @transform_2(%arg0: i32) -> (i32, i32, i32) {
    %c0_i32 = arith.constant 0 : i32
    %c0_i32_0 = arith.constant 0 : i32
    %c0_i32_1 = arith.constant 0 : i32
    %c0_i32_2 = arith.constant 0 : i32
    return %c0_i32, %c0_i32_0, %c0_i32_1 : i32, i32, i32
  }
  func.func @transform_3(%arg0: i32) -> (i32, i32) {
    %c0_i32 = arith.constant 0 : i32
    %c0_i32_0 = arith.constant 0 : i32
    return %c0_i32, %arg0 : i32, i32
  }
}

</mosaic_0001>

<bundles_post_ra>
// kernel: tpu_custom_call.1
= control target key start
LH: loop header
LB: loop body
LE: loop exit
PB: predicated region body
PF: predicated region fallthrough
CT: control target
= control target key end

     0   :  { %8 = vsyncpa [#allocation3], 0  ;;  %s1176_s0 = inlined_call_operand.hbm [shape: f32[16,256], index: 0, kind: input, shape index: {}]   ;;  %s1177_s1 = inlined_call_operand.hbm [shape: f32[9,16,16], index: 1, kind: input, shape index: {}]   ;;  %s1178_s2 = inlined_call_operand.hbm [shape: f32[9,16,128], index: 2, kind: input, shape index: {}]   ;;  %s1179_s3 = inlined_call_operand.hbm [shape: f32[2,256], index: 3, kind: output, shape index: {}]  }
   0x1   :  { %10 = vsyncpa [#allocation3 + $0x1], 0 }
   0x2   :  { %11 = vsyncpa [#allocation6], 0 }
   0x3   :  { %12 = vsyncpa [#allocation4], 0 }
   0x4   :  { %14 = vsyncpa [#allocation4 + $0x1], 0  ;;  %s1008_s12 = smov 0   ;;  %s1010_s13 = smov 0  }
   0x5   :  { %s1012_s14 = smov 0   ;;  %s1014_s15 = smov 0  }
   0x6 LB: > { %s1029_s16 = sadd.s32 4294967295, %s981_s15   ;;  %s711_s17 = sadd.s32 4294967294, %s981_s15   ;;  %s981_s15 = sphi %s1014_s15, %s1189_s15   ;;  %s977_s14 = sphi %s1012_s14, %s1188_s14   ;;  %s973_s13 = sphi %s1010_s13, %s1187_s13   ;;  %s969_s12 = sphi %s1008_s12, %s1186_s12  }
   0x7   : > { %p40_p0 = scmp.ne.s32.totalorder %s973_s13, %s969_s12  ;;  %p41_p1 = scmp.eq.s32.totalorder %s1029_s16, 0 }
   0x8   : > { %p106_p2 = scmp.eq.s32.totalorder %s1029_s16, 1  ;;  %p112_p3 = scmp.eq.s32.totalorder %s711_s17, 1 }
   0x9   : > { %p1038_p4 = por %p41_p1, %p40_p0  ;;  %p712_p5 = scmp.ge.s32.totalorder %s981_s15, 1 }
   0xa   : > { %p1043_p6 = por %p112_p3, %p40_p0  ;;  %p119_p7 = scmp.lt.s32.totalorder %s981_s15, 3 }
   0xb   : > { %s130_s22 = sshll.u32 %s1177_s1, 4  ;;  %s983_s24 = smov [#allocation5]   ;;  %s131_s22 = int_to_ptr.hbm [resolvable:$true] %s130_s22 }
   0xc   : > { %p1051_p8 = pnand %p712_p5, %p119_p7  ;;  %s132_s25 = sshll.u32 %s983_s24, 4  ;;  %s133_s25 = int_to_ptr.vmem [resolvable:$true] %s132_s25 }
   0xd   : > { %s144_s28 = sshll.u32 %s1178_s2, 4  ;;  %s984_s29 = smov 128   ;;  %s145_s28 = int_to_ptr.hbm [resolvable:$true] %s144_s28 }
   0xe   : > { %p759_p9 = pneg %p1051_p8  ;;  %s985_s30 = smov 8  }
   0xf   : > { %s986_s4 = smov [#allocation7]   ;;  %s1070_s6 = sadd.s32 1, %s981_s15  }
  0x10   : > { %p760_p10 = pnand %p759_p9, %p41_p1  ;;  %s146_s5 = sshll.u32 %s986_s4, 4  ;;  %s147_s5 = int_to_ptr.vmem [resolvable:$true] %s146_s5 }
  0x11   : > { %s27_s7 = sadd.s32 1, %s977_s14  ;;  %s24_s8 = ssub.s32 %s981_s15, %s1070_s6 }
  0x12   : > { %762 = dma.hbm_to_vmem [thread:$0]  (!%p760_p10), %s131_s22, 2304, %s133_s25, [#allocation6], %s984_s29, %s984_s29, %s985_s30  }
  0x13   : > { %765 = dma.hbm_to_vmem [thread:$0]  (!%p760_p10), %s145_s28, 2304, %s147_s5, [#allocation6], %s984_s29, %s984_s29, %s985_s30  }
  0x14   : > { %p34_p12 = scmp.ne.s32.totalorder %s977_s14, %s973_s13  ;;  %p25_p13 = scmp.eq.s32.totalorder %s24_s8, 0 }
  0x15   : > { %p35_p0 = scmp.eq.s32.totalorder %s981_s15, 0  ;;  %p776_p5 = scmp.lt.s32.totalorder %s981_s15, 2 }
  0x16   : > { %p1080_p3 = por %p106_p2, %p34_p12  ;;  %s160_s11 = sand.u32 1, %s977_s14  }
  0x17   : > { %s1086_s10 = scalar_select %p25_p13, %s977_s14, %s27_s7  }
  0x18   : > { %p36_p7 = por %p35_p0, %p34_p12  ;;  %s716_s17 = sshll.u32 %s160_s11, 4 }
  0x19   : > { %s717_s20 = sshll.u32 %s981_s15, 3  ;;  %s164_s25 = scalar_lea.vmem [#allocation2], %s716_s17 }
  0x1a   : > { %s168_s24 = scalar_lea.hbm %s1176_s0, %s717_s20  ;;  %s171_s26 = sshll.u32 %s164_s25, 4  ;;  %s172_s26 = int_to_ptr.vmem [resolvable:$true] %s171_s26 }
  0x1b   : > { %s169_s27 = sshll.u32 %s168_s24, 4  ;;  %p1093_p2 = pnand %p776_p5, %p36_p7  ;;  %s170_s27 = int_to_ptr.hbm [resolvable:$true] %s169_s27 }
  0x1c   : > { %s161_s4 = scalar_lea.sflag [#allocation3], %s160_s11  ;;  %s881_s5 = sshra.s32 %s170_s27, 4  ;;  %s882_s5 = int_to_ptr.hbm [resolvable:$true] %s881_s5 }
  0x1d   : > { %s883_s7 = scalar_lea.hbm %s882_s5, 16  ;;  %p885_p10 = pneg %p1093_p2 }
  0x1e   : > { %p884_p9 = scmp.ne.s32.totalorder %s882_s5, %s883_s7  ;;  %s888_s20 = scalar_lea.hbm %s1176_s0, 32 }
  0x1f   : > { %p889_p0 = scmp.lt.s32.totalorder %s882_s5, %s1176_s0  ;;  %p890_p5 = scmp.lt.s32.totalorder %s888_s20, %s883_s7 }
  0x20   : > { %p886_p12 = pnand %p885_p10, %p884_p9 }
  0x21   : > { %p891_p7 = por %p890_p5, %p889_p0 }
  0x22   : > { %p887_p13 = pneg %p886_p12 }
  0x24   : > { %p892_p11 = pnand %p891_p7, %p887_p13 }
  0x26   : > { %895 = shalt.err (!%p892_p11)
}
  0x27   : > { %s987_s11 = smov 256   ;;  %183 = sbr.rel (%p1051_p8) target bundleno = 1380 (0x564), region = 32 }
  0x28   : > { %769 = dma.hbm_to_vmem [thread:$0]  (!%p1093_p2), %s170_s27, 256, %s172_s26, %s161_s4, %s987_s11, %s984_s29, %s985_s30  }
  0x29   : > { %s1112_s24 = sand.u32 (!%p1051_p8), 1, %s973_s13  }
  0x2a   : > { %s719_s25 = sshll.u32 (!%p1051_p8), %s1112_s24, 4  ;;  %s186_s5 = scalar_lea.sflag (!%p1051_p8), [#allocation3], %s1112_s24 }
  0x2b   : > { %s189_s7 = scalar_lea.vmem (!%p1051_p8), [#allocation2], %s719_s25 }
  0x2c   : > { %956 = dma.done.wait (%p1038_p4), %s186_s5, 256  }
  0x2d   : > { %958 = vsyncadd (%p1038_p4), %s186_s5, 4294967040 }
  0x2e   : > { %960 = dma.done.wait (%p41_p1), [#allocation6], 4608  }
  0x2f   : > { %962 = vsyncadd (%p41_p1), [#allocation6], 4294962688  ;;  %v224_v0 = vld [vmem:[%s189_s7 + $0x8] sm:$0xff]  ;;  %v223_v1 = vld [vmem:[%s189_s7] sm:$0xff]  ;;  %vm229_vm0 = vcmask 130048   ;;  %s722_s18 = sshll.u32 %s1112_s24, 1 }
  0x30   : > { %250 = vmatpush.msra.mxu0 %v224_v0  ;;  %745 = vmatpush.msra.mxu1 %v224_v0  ;;  %v225_v2 = vld [vmem:[#allocation5] sm:$0xff]  ;;  %v226_v3 = vld [vmem:[#allocation5 + $0x8] sm:$0xff]  ;;  %v227_v4 = vld [vmem:[#allocation7] sm:$0xff]  ;;  %s742_s23 = sshll.u32 %s1029_s16, 1  ;;  %s222_s27 = scalar_lea.vmem [#allocation8], %s722_s18 }
  0x31   : > { %v228_v5 = vld [vmem:[#allocation7 + $0x8] sm:$0xff]  ;;  %v266_v13 = vld [vmem:[#allocation5 + $0x10] sm:$0xff]  ;;  %v269_v17 = vld [vmem:[#allocation7 + $0x10] sm:$0xff]  ;;  %s617_s26 = scalar_lea.hbm %s1179_s3, %s742_s23  ;;  %s619_s28 = sshll.u32 %s222_s27, 4  ;;  %s620_s28 = int_to_ptr.vmem [resolvable:$true] %s619_s28 }
  0x32   : > { %251 = vmatpush.msra.mxu0 %v223_v1  ;;  %746 = vmatpush.msra.mxu1 %v223_v1  ;;  %v267_v15 = vld [vmem:[#allocation5 + $0x18] sm:$0xff]  ;;  %v270_v18 = vld [vmem:[#allocation7 + $0x18] sm:$0xff]  ;;  %v307_v25 = vld [vmem:[#allocation5 + $0x20] sm:$0xff]  ;;  %s621_s4 = sshll.u32 %s617_s26, 4  ;;  %s607_s8 = scalar_lea.sflag [#allocation4], %s1112_s24  ;;  %s622_s4 = int_to_ptr.hbm [resolvable:$true] %s621_s4 }
  0x33   : > { %723 = vmatmul.msk.f32.vlgmr.msra.gmra.mxu0 %vm229_vm0, %v225_v2  ;;  %724 = vmatmul.msk.f32.vlgmr.msra.gmra.mxu1 %vm229_vm0, %v226_v3  ;;  %v308_v27 = vld [vmem:[#allocation5 + $0x28] sm:$0xff]  ;;  %v310_v29 = vld [vmem:[#allocation7 + $0x20] sm:$0xff]  ;;  %v311_v30 = vld [vmem:[#allocation7 + $0x28] sm:$0xff]  ;;  %s925_s17 = sshra.s32 %s622_s4, 4  ;;  %s931_s22 = scalar_lea.hbm %s1179_s3, 4  ;;  %s926_s17 = int_to_ptr.hbm [resolvable:$true] %s925_s17 }
  0x34   : > { %v348_v37 = vld [vmem:[#allocation5 + $0x30] sm:$0xff]  ;;  %v349_v39 = vld [vmem:[#allocation5 + $0x38] sm:$0xff]  ;;  %v351_v41 = vld [vmem:[#allocation7 + $0x30] sm:$0xff]  ;;  %s927_s20 = scalar_lea.hbm %s926_s17, 2  ;;  %p932_p11 = scmp.lt.s32.totalorder %s926_s17, %s1179_s3 }
  0x35   : > { %v352_v42 = vld [vmem:[#allocation7 + $0x38] sm:$0xff]  ;;  %v389_v49 = vld [vmem:[#allocation5 + $0x40] sm:$0xff]  ;;  %v392_v53 = vld [vmem:[#allocation7 + $0x40] sm:$0xff]  ;;  %p928_p1 = scmp.ne.s32.totalorder %s926_s17, %s927_s20  ;;  %p933_p2 = scmp.lt.s32.totalorder %s931_s22, %s927_s20 }
  0x36   : > { %v390_v51 = vld [vmem:[#allocation5 + $0x48] sm:$0xff]  ;;  %v393_v54 = vld [vmem:[#allocation7 + $0x48] sm:$0xff]  ;;  %v430_v61 = vld [vmem:[#allocation5 + $0x50] sm:$0xff] }
  0x37   : > { %v431_v63 = vld [vmem:[#allocation5 + $0x58] sm:$0xff]  ;;  %v433_v1 = vld [vmem:[#allocation7 + $0x50] sm:$0xff]  ;;  %v434_v2 = vld [vmem:[#allocation7 + $0x58] sm:$0xff]  ;;  %p929_p4 = pnand %p928_p1, %p1080_p3  ;;  %p934_p9 = por %p933_p2, %p932_p11 }
  0x39   : > { %p930_p8 = pneg %p929_p4 }
  0x3b   : > { %p935_p10 = pnand %p934_p9, %p930_p8 }
  0xb0   : > { %v253_v6 = vpop.f32.mrf.mxu0  ;;  %v256_v7 = vpop.f32.mrf.mxu1 }
  0xb1   : > { %v254_v8 = vadd.f32 %v253_v6, %v227_v4  ;;  %v257_v9 = vadd.f32 %v256_v7, %v228_v5 }
  0xb3   : > { %vm260_vm1 = vcmp.gt.f32.partialorder %v257_v9, 0.0  ;;  %v262_v10 = vmul.f32 0.01, %v257_v9  ;;  %v261_v11 = vmul.f32 0.01, %v254_v8  ;;  %vm259_vm2 = vcmp.gt.f32.partialorder %v254_v8, 0.0 }
  0xb5   : > { %v264_v12 = vsel %vm260_vm1, %v257_v9, %v262_v10  ;;  %v263_v14 = vsel %vm259_vm2, %v254_v8, %v261_v11  ;;  %v471_v9 = vld [vmem:[#allocation5 + $0x60] sm:$0xff]  ;;  %v472_v11 = vld [vmem:[#allocation5 + $0x68] sm:$0xff]  ;;  %vm585_vm2 = vcmask 1041408  }
  0xb6   : > { %291 = vmatpush.msrb.mxu1 %v264_v12 }
  0xb8   : > { %292 = vmatpush.msrb.mxu1 %v263_v14  ;;  %v475_v14 = vld [vmem:[#allocation7 + $0x68] sm:$0xff] }
  0xb9   : > { %725 = vmatmul.msk.f32.vlgmr.msrb.gmra.mxu1 %vm229_vm0, %v266_v13  ;;  %v474_v13 = vld [vmem:[#allocation7 + $0x60] sm:$0xff] }
  0xc1   : > { %726 = vmatmul.msk.f32.gmra.mxu1 %vm229_vm0, %v267_v15 }
 0x136   : > { %v294_v16 = vpop.f32.mrf.mxu1 }
 0x137   : > { %v295_v19 = vadd.f32 %v294_v16, %v269_v17 }
 0x139   : > { %v302_v23 = vmul.f32 0.01, %v295_v19  ;;  %vm300_vm4 = vcmp.gt.f32.partialorder %v295_v19, 0.0 }
 0x13b   : > { %v304_v26 = vsel %vm300_vm4, %v295_v19, %v302_v23  ;;  %v513_v23 = vld [vmem:[#allocation5 + $0x78] sm:$0xff] }
 0x13e   : > { %v297_v20 = vpop.f32.mrf.mxu1 }
 0x13f   : > { %v298_v21 = vadd.f32 %v297_v20, %v270_v18 }
 0x141   : > { %vm301_vm3 = vcmp.gt.f32.partialorder %v298_v21, 0.0  ;;  %v303_v22 = vmul.f32 0.01, %v298_v21 }
 0x143   : > { %v305_v24 = vsel %vm301_vm3, %v298_v21, %v303_v22  ;;  %v512_v21 = vld [vmem:[#allocation5 + $0x70] sm:$0xff] }
 0x144   : > { %332 = vmatpush.msra.mxu2 %v305_v24 }
 0x146   : > { %333 = vmatpush.msra.mxu2 %v304_v26  ;;  %v516_v26 = vld [vmem:[#allocation7 + $0x78] sm:$0xff] }
 0x147   : > { %727 = vmatmul.msk.f32.vlgmr.msra.gmra.mxu2 %vm229_vm0, %v307_v25  ;;  %v515_v25 = vld [vmem:[#allocation7 + $0x70] sm:$0xff] }
 0x14f   : > { %728 = vmatmul.msk.f32.gmra.mxu2 %vm229_vm0, %v308_v27 }
 0x1ca   : > { %v335_v28 = vpop.f32.mrf.mxu2 }
 0x1cb   : > { %v336_v31 = vadd.f32 %v335_v28, %v310_v29 }
 0x1cd   : > { %v343_v35 = vmul.f32 0.01, %v336_v31  ;;  %vm341_vm6 = vcmp.gt.f32.partialorder %v336_v31, 0.0 }
 0x1cf   : > { %v345_v38 = vsel %vm341_vm6, %v336_v31, %v343_v35  ;;  %v554_v35 = vld [vmem:[#allocation5 + $0x88] sm:$0xff] }
 0x1d2   : > { %v338_v32 = vpop.f32.mrf.mxu2 }
 0x1d3   : > { %v339_v33 = vadd.f32 %v338_v32, %v311_v30 }
 0x1d5   : > { %vm342_vm5 = vcmp.gt.f32.partialorder %v339_v33, 0.0  ;;  %v344_v34 = vmul.f32 0.01, %v339_v33 }
 0x1d7   : > { %v346_v36 = vsel %vm342_vm5, %v339_v33, %v344_v34  ;;  %v553_v33 = vld [vmem:[#allocation5 + $0x80] sm:$0xff] }
 0x1d8   : > { %373 = vmatpush.msra.mxu3 %v346_v36  ;;  %v556_v36 = vld [vmem:[#allocation7 + $0x80] sm:$0xff] }
 0x1da   : > { %374 = vmatpush.msra.mxu3 %v345_v38 }
 0x1db   : > { %729 = vmatmul.msk.f32.vlgmr.msra.gmra.mxu3 %vm229_vm0, %v348_v37 }
 0x1e3   : > { %730 = vmatmul.msk.f32.gmra.mxu3 %vm229_vm0, %v349_v39 }
 0x25e   : > { %v376_v40 = vpop.f32.mrf.mxu3 }
 0x25f   : > { %v377_v43 = vadd.f32 %v376_v40, %v351_v41 }
 0x261   : > { %v384_v47 = vmul.f32 0.01, %v377_v43  ;;  %vm382_vm8 = vcmp.gt.f32.partialorder %v377_v43, 0.0 }
 0x263   : > { %v386_v50 = vsel %vm382_vm8, %v377_v43, %v384_v47 }
 0x266   : > { %v379_v44 = vpop.f32.mrf.mxu3 }
 0x267   : > { %v380_v45 = vadd.f32 %v379_v44, %v352_v42 }
 0x269   : > { %vm383_vm7 = vcmp.gt.f32.partialorder %v380_v45, 0.0  ;;  %v385_v46 = vmul.f32 0.01, %v380_v45 }
 0x26b   : > { %v387_v48 = vsel %vm383_vm7, %v380_v45, %v385_v46 }
 0x26c   : > { %414 = vmatpush.msrb.mxu0 %v387_v48 }
 0x26e   : > { %415 = vmatpush.msrb.mxu0 %v386_v50 }
 0x26f   : > { %731 = vmatmul.msk.f32.vlgmr.msrb.gmra.mxu0 %vm229_vm0, %v389_v49 }
 0x277   : > { %732 = vmatmul.msk.f32.gmra.mxu0 %vm229_vm0, %v390_v51 }
 0x2ec   : > { %v417_v52 = vpop.f32.mrf.mxu0 }
 0x2ed   : > { %v418_v55 = vadd.f32 %v417_v52, %v392_v53 }
 0x2ef   : > { %v425_v58 = vmul.f32 0.01, %v418_v55  ;;  %vm423_vm10 = vcmp.gt.f32.partialorder %v418_v55, 0.0 }
 0x2f1   : > { %v427_v62 = vsel %vm423_vm10, %v418_v55, %v425_v58 }
 0x2f4   : > { %v420_v56 = vpop.f32.mrf.mxu0 }
 0x2f5   : > { %v421_v57 = vadd.f32 %v420_v56, %v393_v54 }
 0x2f7   : > { %vm424_vm9 = vcmp.gt.f32.partialorder %v421_v57, 0.0  ;;  %v426_v59 = vmul.f32 0.01, %v421_v57 }
 0x2f9   : > { %v428_v60 = vsel %vm424_vm9, %v421_v57, %v426_v59 }
 0x2fa   : > { %455 = vmatpush.msra.mxu1 %v428_v60 }
 0x2fc   : > { %456 = vmatpush.msra.mxu1 %v427_v62 }
 0x2fd   : > { %733 = vmatmul.msk.f32.vlgmr.msra.gmra.mxu1 %vm229_vm0, %v430_v61 }
 0x305   : > { %734 = vmatmul.msk.f32.gmra.mxu1 %vm229_vm0, %v431_v63 }
 0x37a   : > { %v458_v0 = vpop.f32.mrf.mxu1 }
 0x37b   : > { %v459_v3 = vadd.f32 %v458_v0, %v433_v1 }
 0x37d   : > { %v466_v7 = vmul.f32 0.01, %v459_v3  ;;  %vm464_vm12 = vcmp.gt.f32.partialorder %v459_v3, 0.0 }
 0x37f   : > { %v468_v10 = vsel %vm464_vm12, %v459_v3, %v466_v7 }
 0x382   : > { %v461_v4 = vpop.f32.mrf.mxu1 }
 0x383   : > { %v462_v5 = vadd.f32 %v461_v4, %v434_v2 }
 0x385   : > { %vm465_vm11 = vcmp.gt.f32.partialorder %v462_v5, 0.0  ;;  %v467_v6 = vmul.f32 0.01, %v462_v5 }
 0x387   : > { %v469_v8 = vsel %vm465_vm11, %v462_v5, %v467_v6 }
 0x388   : > { %496 = vmatpush.msrb.mxu2 %v469_v8 }
 0x38a   : > { %497 = vmatpush.msrb.mxu2 %v468_v10 }
 0x38b   : > { %735 = vmatmul.msk.f32.vlgmr.msrb.gmra.mxu2 %vm229_vm0, %v471_v9 }
 0x393   : > { %736 = vmatmul.msk.f32.gmra.mxu2 %vm229_vm0, %v472_v11 }
 0x40e   : > { %v499_v12 = vpop.f32.mrf.mxu2 }
 0x40f   : > { %v500_v15 = vadd.f32 %v499_v12, %v474_v13 }
 0x411   : > { %v507_v19 = vmul.f32 0.01, %v500_v15  ;;  %vm505_vm14 = vcmp.gt.f32.partialorder %v500_v15, 0.0 }
 0x413   : > { %v509_v22 = vsel %vm505_vm14, %v500_v15, %v507_v19 }
 0x416   : > { %v502_v16 = vpop.f32.mrf.mxu2 }
 0x417   : > { %v503_v17 = vadd.f32 %v502_v16, %v475_v14 }
 0x419   : > { %vm506_vm13 = vcmp.gt.f32.partialorder %v503_v17, 0.0  ;;  %v508_v18 = vmul.f32 0.01, %v503_v17 }
 0x41b   : > { %v510_v20 = vsel %vm506_vm13, %v503_v17, %v508_v18 }
 0x41c   : > { %537 = vmatpush.msrb.mxu3 %v510_v20 }
 0x41e   : > { %538 = vmatpush.msrb.mxu3 %v509_v22 }
 0x41f   : > { %737 = vmatmul.msk.f32.vlgmr.msrb.gmra.mxu3 %vm229_vm0, %v512_v21 }
 0x427   : > { %738 = vmatmul.msk.f32.gmra.mxu3 %vm229_vm0, %v513_v23 }
 0x4a2   : > { %v540_v24 = vpop.f32.mrf.mxu3 }
 0x4a3   : > { %v541_v27 = vadd.f32 %v540_v24, %v515_v25 }
 0x4a5   : > { %v548_v30 = vmul.f32 0.01, %v541_v27  ;;  %vm546_vm1 = vcmp.gt.f32.partialorder %v541_v27, 0.0 }
 0x4a7   : > { %v550_v34 = vsel %vm546_vm1, %v541_v27, %v548_v30 }
 0x4aa   : > { %v543_v28 = vpop.f32.mrf.mxu3 }
 0x4ab   : > { %v544_v29 = vadd.f32 %v543_v28, %v516_v26 }
 0x4ad   : > { %vm547_vm15 = vcmp.gt.f32.partialorder %v544_v29, 0.0  ;;  %v549_v31 = vmul.f32 0.01, %v544_v29 }
 0x4af   : > { %v551_v32 = vsel %vm547_vm15, %v544_v29, %v549_v31 }
 0x4b0   : > { %577 = vmatpush.msra.mxu0 %v551_v32 }
 0x4b2   : > { %578 = vmatpush.msra.mxu0 %v550_v34 }
 0x4b3   : > { %739 = vmatmul.msk.f32.vlgmr.msra.gmra.mxu0 %vm229_vm0, %v553_v33 }
 0x4bb   : > { %740 = vmatmul.msk.f32.gmra.mxu0 %vm229_vm0, %v554_v35 }
 0x530   : > { %v580_v37 = vpop.f32.mrf.mxu0 }
 0x531   : > { %v581_v38 = vadd.f32 %v580_v37, %v556_v36 }
 0x533   : > { %v586_v39 = vsel %vm585_vm2, %v581_v38, -inf }
 0x534   : > { %v587_v40 = vrot.slane %v586_v39, 4 }
 0x536   : > { %v588_v41 = vmax.f32 %v586_v39, %v587_v40 }
 0x538   : > { %v589_v42 = vrot.slane %v588_v41, 2  ;;  %v583_v43 = vpop.f32.mrf.mxu0 }
 0x53a   : > { %v590_v44 = vmax.f32 %v588_v41, %v589_v42 }
 0x53c   : > { %v591_v45 = vrot.slane %v590_v44, 1 }
 0x53e   : > { %v592_v46 = vmax.f32 %v590_v44, %v591_v45 }
 0x540   : > { %v593_v47 = vsub.f32 %v581_v38, %v592_v46 }
 0x542   : > { %v594_v48 = vmul.f32 1.442695, %v593_v47 }
 0x544   : > { %817 = vpow2.f32 %v594_v48 }
 0x54a   : > { %v818_v49 = vpop.eup %817 }
 0x54b   : > { %v596_v50 = vsel %vm585_vm2, %v818_v49, 0.0 }
 0x54c   : > { %v597_v51 = vrot.slane %v596_v50, 4 }
 0x54e   : > { %v598_v52 = vadd.f32 %v597_v51, %v596_v50 }
 0x550   : > { %v599_v53 = vrot.slane %v598_v52, 2 }
 0x552   : > { %v600_v54 = vadd.f32 %v599_v53, %v598_v52 }
 0x554   : > { %v601_v55 = vrot.slane %v600_v54, 1 }
 0x556   : > { %v602_v56 = vadd.f32 %v601_v55, %v600_v54 }
 0x558   : > { %819 = vrcp.f32 %v602_v56 }
 0x55e   : > { %v820_v57 = vpop.eup %819 }
 0x55f   : > { %v604_v58 = vmul.f32 %v820_v57, %v818_v49 }
 0x561   : > { %605 = vst [vmem:[%s222_s27] sm:$0x3] %v604_v58 }
 0x562   : > { %938 = shalt.err (!%p935_p10)
}
 0x563   : > { %757 = dma.vmem_to_hbm [thread:$0]  (%p1080_p3), %s620_s28, 32, %s622_s4, %s607_s8  }
 0x564 PF: > { %s633_s24 = sand.u32 1, %s969_s12   ;;  %p1185_p12 = scmp.ge.s32.totalorder %s981_s15, 2 }
 0x565   : > { %s634_s5 = scalar_lea.sflag [#allocation4], %s633_s24 }
 0x566   : > { %p771_p13 = pnand %p1185_p12, %p1043_p6 }
 0x568   : > { %p772_p0 = pneg %p771_p13 }
 0x56a   : > { %964 = dma.done.wait (%p772_p0), %s634_s5, 32  }
 0x56b   : > { %966 = vsyncadd (%p772_p0), %s634_s5, 4294967264  ;;  %p17_p5 = scmp.ge.s32.totalorder %s1070_s6, 4   ;;  %s1186_s12 = smov %s973_s13 }
 0x56c   : > { %s1187_s13 = smov %s977_s14  ;;  %s1188_s14 = smov %s1086_s10 }
 0x56d   : > { %s1189_s15 = smov %s1070_s6  ;;  %19 = sbr.rel (!%p17_p5) target bundleno = 6 (0x6), region = 101 }
 0x572   :  { %640 = vsyncpa [#allocation3], 1 }
 0x573   :  { %642 = vsyncpa [#allocation3 + $0x1], 1 }
 0x574   :  { %643 = vsyncpa [#allocation6], 1 }
 0x575   :  { %644 = vsyncpa [#allocation4], 1 }
 0x576   :  { %646 = vsyncpa [#allocation4 + $0x1], 1 }

</bundles_post_ra>
